<compile_context>
chip_gen: v6e
topology: v6e:2x2x1
jax: 0.10.0
libtpu: 0.0.40
codegen_flags: <defaults>
</compile_context>

<pallas_src>
import functools

import jax
import jax.numpy as jnp
from jax import lax
from jax.experimental import pallas as pl
from jax.experimental.pallas import tpu as pltpu

D_MODEL = 32
D_FF = 64
LN_EPS = 1e-5  # PyTorch nn.LayerNorm default


def _round_up(x, m):
    return ((x + m - 1) // m) * m


def _pwff_fused_kernel(xv_ref, xd_ref, w1_ref, b1_ref, w2_ref, b2_ref,
                       g_ref, beta_ref, seg_ref, ov_ref, od_ref, *, inv_d):
    """One (tile_rows/pack, pack*D) packed tile of each stream.

    Pre-packed params (pack = 128 // d_model tokens per 128-lane row):
      w1_ref : (pack*D,  pack*Dff)  block-diagonal replication of W1
      w2_ref : (pack*Dff, pack*D)   block-diagonal replication of W2
      seg_ref: (pack*D,  pack*D)    0/1 segment-sum matrix (LayerNorm stats)
    so a packed row holding `pack` tokens transforms exactly like `pack`
    independent (1, D) rows, but with all 128 lanes in use.

    All dots accumulate in f32 (preferred_element_type); the Mosaic default
    f32 matmul lowering is f32-accurate (verified by the 1e-4 reference check
    in __main__), so no hi/lo splitting is needed for the LN statistics.
    """
    w1 = w1_ref[...]
    b1 = b1_ref[...]
    w2 = w2_ref[...]
    b2 = b2_ref[...]
    g = g_ref[...]
    be = beta_ref[...]
    seg = seg_ref[...]

    def pwff(x_ref):
        x = x_ref[...]
        if x.dtype != jnp.float32:
            x = x.astype(jnp.float32)
        # fc1 + ReLU (MXU, f32 accumulate)
        h = jnp.dot(x, w1, preferred_element_type=jnp.float32) + b1
        h = jnp.maximum(h, 0.0)
        # fc2
        out = jnp.dot(h, w2, preferred_element_type=jnp.float32) + b2
        # residual + LayerNorm over each D-wide segment of the packed row
        r = x + out
        mean = jnp.dot(r, seg, preferred_element_type=jnp.float32) * inv_d
        xc = r - mean
        var = jnp.dot(xc * xc, seg, preferred_element_type=jnp.float32) * inv_d
        return xc * lax.rsqrt(var + LN_EPS) * g + be

    ov_ref[...] = pwff(xv_ref).astype(ov_ref.dtype)
    od_ref[...] = pwff(xd_ref).astype(od_ref.dtype)


def _choose_tile(mp_tokens, tm_target, row_align, min_tiles=4):
    """Tokens per tile (multiple of row_align), capped at mp_tokens.

    Prefers >= min_tiles grid steps when there is enough work: on v7x the
    "parallel" grid axis is sharded across 2 TensorCores, and >= 2 steps per
    core keeps intra-core double-buffering (DMA/compute overlap) alive.
    """
    tm = _round_up(min(tm_target, mp_tokens), row_align)
    if pl.cdiv(mp_tokens, tm) < min_tiles:
        want = _round_up(pl.cdiv(mp_tokens, min_tiles), row_align)
        if row_align <= want < tm:
            tm = want
    return tm


def pack_params(params):
    """Pack the shared PWFF + LayerNorm parameters into the lane-dense
    block-diagonal layout used by the kernel.

    Call ONCE and reuse the result across forward calls — this keeps the
    jnp.kron / jnp.tile packing out of the per-step jit.
    """
    w1, b1, w2, b2, gamma, beta = params
    d_model, d_ff = w1.shape
    pack = 128 // d_model if (d_model < 128 and 128 % d_model == 0) else 1
    eye = jnp.eye(pack, dtype=jnp.float32)
    w1b = jnp.kron(eye, w1.astype(jnp.float32))                     # (pd, pack*d_ff)
    w2b = jnp.kron(eye, w2.astype(jnp.float32))                     # (pack*d_ff, pd)
    b1t = jnp.tile(jnp.reshape(b1, (1, d_ff)).astype(jnp.float32), (1, pack))
    b2t = jnp.tile(jnp.reshape(b2, (1, d_model)).astype(jnp.float32), (1, pack))
    gt = jnp.tile(jnp.reshape(gamma, (1, d_model)).astype(jnp.float32), (1, pack))
    bt = jnp.tile(jnp.reshape(beta, (1, d_model)).astype(jnp.float32), (1, pack))
    seg = jnp.kron(eye, jnp.ones((d_model, d_model), jnp.float32))  # (pd, pd)
    return (w1b, b1t, w2b, b2t, gt, bt, seg)


@functools.partial(jax.jit, static_argnames=("tm",))
def shallow_layer_forward(video_feats, depth_feats, packed_params, tm=8192):
    """ShallowLayer.forward: same pwff applied to both streams, one kernel.

    Inputs/outputs keep the caller's dtype (feed bf16 features to halve the
    HBM traffic of this bandwidth-bound kernel; compute is f32 either way).
    """
    w1b, b1t, w2b, b2t, gt, bt, seg = packed_params
    d_model = video_feats.shape[-1]
    pd = seg.shape[0]                 # packed row width (128 for d_model=32)
    pack = pd // d_model              # tokens per 128-lane packed row
    row_align = 8 * pack              # packed sublane constraint (8 packed rows)

    v2 = video_feats.reshape(-1, d_model)
    d2 = depth_feats.reshape(-1, d_model)
    mv, md = v2.shape[0], d2.shape[0]
    # Pad only to row_align (<= 8*pack - 1 tokens, zero rows are LN-safe since
    # eps > 0); the tile grid itself handles the ragged final block natively.
    mp = _round_up(max(mv, md, 1), row_align)
    rows = mp // pack

    tile_tokens = _choose_tile(mp, tm, row_align)
    tmp = tile_tokens // pack         # packed rows per tile (multiple of 8)
    n_tiles = pl.cdiv(rows, tmp)

    def pack_rows(x2, m):
        if mp != m:
            x2 = jnp.pad(x2, ((0, mp - m), (0, 0)))
        return x2.reshape(rows, pd)   # free: row-major bitcast reshape

    xv = pack_rows(v2, mv)
    xd = pack_rows(d2, md)

    def full(a):
        return pl.BlockSpec(a.shape, lambda i: (0, 0))

    tile_spec = lambda: pl.BlockSpec((tmp, pd), lambda i: (i, 0))

    grid_spec = pltpu.PrefetchScalarGridSpec(
        num_scalar_prefetch=0,
        grid=(n_tiles,),
        in_specs=[
            tile_spec(),                              # video tokens (packed)
            tile_spec(),                              # depth tokens (packed)
            full(w1b), full(b1t), full(w2b), full(b2t),
            full(gt), full(bt), full(seg),
        ],
        out_specs=(tile_spec(), tile_spec()),
    )

    ov_p, od_p = pl.pallas_call(
        functools.partial(_pwff_fused_kernel, inv_d=1.0 / d_model),
        out_shape=(jax.ShapeDtypeStruct((rows, pd), video_feats.dtype),
                   jax.ShapeDtypeStruct((rows, pd), depth_feats.dtype)),
        grid_spec=grid_spec,
        compiler_params=pltpu.CompilerParams(
            dimension_semantics=("parallel",),
            # Large tiles exceed v5e's 16 MiB scoped-VMEM default; 48 MiB is
            # ample for tm=8192 and still leaves headroom on v7x (64 MiB).
            vmem_limit_bytes=48 * 1024 * 1024,
        ),
    )(xv, xd, w1b, b1t, w2b, b2t, gt, bt, seg)

    vff = ov_p.reshape(mp, d_model)
    dff = od_p.reshape(mp, d_model)
    if mp != mv:
        vff = vff[:mv]
    if mp != md:
        dff = dff[:md]
    return vff.reshape(video_feats.shape), dff.reshape(depth_feats.shape)


def init_params(key, d_model=D_MODEL, d_ff=D_FF):
    # Xavier-uniform-like linears, ones/zeros LayerNorm, zero biases (nn defaults).
    k1, k2 = jax.random.split(key, 2)
    lim1 = (6.0 / (d_model + d_ff)) ** 0.5
    lim2 = (6.0 / (d_ff + d_model)) ** 0.5
    w1 = jax.random.uniform(k1, (d_model, d_ff), jnp.float32, -lim1, lim1)
    w2 = jax.random.uniform(k2, (d_ff, d_model), jnp.float32, -lim2, lim2)
    b1 = jnp.zeros((1, d_ff), jnp.float32)
    b2 = jnp.zeros((1, d_model), jnp.float32)
    gamma = jnp.ones((1, d_model), jnp.float32)
    beta = jnp.zeros((1, d_model), jnp.float32)
    return (w1, b1, w2, b2, gamma, beta)


def pwff_ref(x, p):
    # Pure-JAX reference (eval-mode semantics: dropout == identity).
    w1, b1, w2, b2, g, be = p
    h = jnp.maximum(x @ w1 + b1, 0.0)
    out = h @ w2 + b2
    r = x + out
    mean = jnp.mean(r, axis=-1, keepdims=True)
    var = jnp.mean((r - mean) ** 2, axis=-1, keepdims=True)
    return (r - mean) / jnp.sqrt(var + LN_EPS) * g + be


if __name__ == "__main__":
    key = jax.random.PRNGKey(0)
    kp, kv, kd = jax.random.split(key, 3)

    B, N = 2, 8
    params = init_params(kp)
    packed = pack_params(params)       # packed once, reused across calls
    video_feats = jax.random.normal(kv, (B, N, D_MODEL), jnp.float32)
    depth_feats = jax.random.normal(kd, (B, N, D_MODEL), jnp.float32)

    vff, dff = shallow_layer_forward(video_feats, depth_feats, packed)
    jax.block_until_ready((vff, dff))
    assert vff.shape == video_feats.shape and dff.shape == depth_feats.shape
    assert jnp.allclose(vff, pwff_ref(video_feats, params), atol=1e-4, rtol=1e-4)
    assert jnp.allclose(dff, pwff_ref(depth_feats, params), atol=1e-4, rtol=1e-4)

    # Ragged token count (150 -> padded to row_align=32, multi-tile grid).
    kv2, kd2 = jax.random.split(jax.random.PRNGKey(1), 2)
    v2 = jax.random.normal(kv2, (3, 50, D_MODEL), jnp.float32)
    d2 = jax.random.normal(kd2, (3, 50, D_MODEL), jnp.float32)
    vff2, dff2 = shallow_layer_forward(v2, d2, packed)
    jax.block_until_ready((vff2, dff2))
    assert jnp.allclose(vff2, pwff_ref(v2, params), atol=1e-4, rtol=1e-4)
    assert jnp.allclose(dff2, pwff_ref(d2, params), atol=1e-4, rtol=1e-4)

    # row_align-aligned but not tile-aligned (160 tokens): NO wrapper padding,
    # partial final grid block handled inside the pallas_call.
    kv3, kd3 = jax.random.split(jax.random.PRNGKey(2), 2)
    v3 = jax.random.normal(kv3, (5, 32, D_MODEL), jnp.float32)
    d3 = jax.random.normal(kd3, (5, 32, D_MODEL), jnp.float32)
    vff3, dff3 = shallow_layer_forward(v3, d3, packed)
    jax.block_until_ready((vff3, dff3))
    assert jnp.allclose(vff3, pwff_ref(v3, params), atol=1e-4, rtol=1e-4)
    assert jnp.allclose(dff3, pwff_ref(d3, params), atol=1e-4, rtol=1e-4)

    print("KERNEL_OK")
</pallas_src>

<mosaic_0001>
module attributes {stable_mosaic.version = 11 : i64} {
  func.func @_pwff_fused_kernel(%arg0: i32, %arg1: memref<8x128xf32, #tpu.memory_space<vmem>>, %arg2: memref<8x128xf32, #tpu.memory_space<vmem>>, %arg3: memref<128x256xf32, #tpu.memory_space<vmem>>, %arg4: memref<1x256xf32, #tpu.memory_space<vmem>>, %arg5: memref<256x128xf32, #tpu.memory_space<vmem>>, %arg6: memref<1x128xf32, #tpu.memory_space<vmem>>, %arg7: memref<1x128xf32, #tpu.memory_space<vmem>>, %arg8: memref<1x128xf32, #tpu.memory_space<vmem>>, %arg9: memref<128x128xf32, #tpu.memory_space<vmem>>, %arg10: memref<8x128xf32, #tpu.memory_space<vmem>>, %arg11: memref<8x128xf32, #tpu.memory_space<vmem>>) attributes {dimension_semantics = [#tpu.dimension_semantics<parallel>], iteration_bounds = array<i64: 1>, scalar_prefetch = 0 : i64, scratch_operands = 0 : i64, tpu.core_type = #tpu.core_type<tc>, window_params = [{transform_indices = @transform_0, window_bounds = array<i64: 8, 128>}, {transform_indices = @transform_1, window_bounds = array<i64: 8, 128>}, {pipeline_mode = #tpu.pipeline_mode<synchronous>, transform_indices = @transform_2, window_bounds = array<i64: 128, 256>}, {pipeline_mode = #tpu.pipeline_mode<synchronous>, transform_indices = @transform_3, window_bounds = array<i64: 1, 256>}, {pipeline_mode = #tpu.pipeline_mode<synchronous>, transform_indices = @transform_4, window_bounds = array<i64: 256, 128>}, {pipeline_mode = #tpu.pipeline_mode<synchronous>, transform_indices = @transform_5, window_bounds = array<i64: 1, 128>}, {pipeline_mode = #tpu.pipeline_mode<synchronous>, transform_indices = @transform_6, window_bounds = array<i64: 1, 128>}, {pipeline_mode = #tpu.pipeline_mode<synchronous>, transform_indices = @transform_7, window_bounds = array<i64: 1, 128>}, {pipeline_mode = #tpu.pipeline_mode<synchronous>, transform_indices = @transform_8, window_bounds = array<i64: 128, 128>}, {transform_indices = @transform_9, window_bounds = array<i64: 8, 128>}, {transform_indices = @transform_10, window_bounds = array<i64: 8, 128>}]} {
    %c0 = arith.constant 0 : index
    %c0_0 = arith.constant 0 : index
    %0 = vector.load %arg3[%c0, %c0_0] : memref<128x256xf32, #tpu.memory_space<vmem>>, vector<128x256xf32>
    %c0_1 = arith.constant 0 : index
    %c0_2 = arith.constant 0 : index
    %1 = vector.load %arg4[%c0_1, %c0_2] : memref<1x256xf32, #tpu.memory_space<vmem>>, vector<1x256xf32>
    %c0_3 = arith.constant 0 : index
    %c0_4 = arith.constant 0 : index
    %2 = vector.load %arg5[%c0_3, %c0_4] : memref<256x128xf32, #tpu.memory_space<vmem>>, vector<256x128xf32>
    %c0_5 = arith.constant 0 : index
    %c0_6 = arith.constant 0 : index
    %3 = vector.load %arg6[%c0_5, %c0_6] : memref<1x128xf32, #tpu.memory_space<vmem>>, vector<1x128xf32>
    %c0_7 = arith.constant 0 : index
    %c0_8 = arith.constant 0 : index
    %4 = vector.load %arg7[%c0_7, %c0_8] : memref<1x128xf32, #tpu.memory_space<vmem>>, vector<1x128xf32>
    %c0_9 = arith.constant 0 : index
    %c0_10 = arith.constant 0 : index
    %5 = vector.load %arg8[%c0_9, %c0_10] : memref<1x128xf32, #tpu.memory_space<vmem>>, vector<1x128xf32>
    %c0_11 = arith.constant 0 : index
    %c0_12 = arith.constant 0 : index
    %6 = vector.load %arg9[%c0_11, %c0_12] : memref<128x128xf32, #tpu.memory_space<vmem>>, vector<128x128xf32>
    %c0_13 = arith.constant 0 : index
    %c0_14 = arith.constant 0 : index
    %7 = vector.load %arg1[%c0_13, %c0_14] : memref<8x128xf32, #tpu.memory_space<vmem>>, vector<8x128xf32>
    %cst = arith.constant dense<0.000000e+00> : vector<8x256xf32>
    %8 = tpu.matmul %7, %0, %cst {dimension_numbers = #tpu.dot_dimension_numbers<[1], [0], [0], [1], [0, 0, 1, 1], [], []>} : vector<8x128xf32>, vector<128x256xf32>, vector<8x256xf32> -> vector<8x256xf32>
    %9 = vector.broadcast %1 : vector<1x256xf32> to vector<8x256xf32>
    %10 = arith.addf %8, %9 : vector<8x256xf32>
    %cst_15 = arith.constant 0.000000e+00 : f32
    %11 = vector.broadcast %cst_15 : f32 to vector<8x256xf32>
    %12 = arith.maximumf %10, %11 : vector<8x256xf32>
    %cst_16 = arith.constant dense<0.000000e+00> : vector<8x128xf32>
    %13 = tpu.matmul %12, %2, %cst_16 {dimension_numbers = #tpu.dot_dimension_numbers<[1], [0], [0], [1], [0, 0, 1, 1], [], []>} : vector<8x256xf32>, vector<256x128xf32>, vector<8x128xf32> -> vector<8x128xf32>
    %14 = vector.broadcast %3 : vector<1x128xf32> to vector<8x128xf32>
    %15 = arith.addf %13, %14 : vector<8x128xf32>
    %16 = arith.addf %7, %15 : vector<8x128xf32>
    %cst_17 = arith.constant dense<0.000000e+00> : vector<8x128xf32>
    %17 = tpu.matmul %16, %6, %cst_17 {dimension_numbers = #tpu.dot_dimension_numbers<[1], [0], [0], [1], [0, 0, 1, 1], [], []>} : vector<8x128xf32>, vector<128x128xf32>, vector<8x128xf32> -> vector<8x128xf32>
    %cst_18 = arith.constant 3.125000e-02 : f32
    %18 = vector.broadcast %cst_18 : f32 to vector<8x128xf32>
    %19 = arith.mulf %17, %18 : vector<8x128xf32>
    %20 = arith.subf %16, %19 : vector<8x128xf32>
    %21 = arith.mulf %20, %20 : vector<8x128xf32>
    %cst_19 = arith.constant dense<0.000000e+00> : vector<8x128xf32>
    %22 = tpu.matmul %21, %6, %cst_19 {dimension_numbers = #tpu.dot_dimension_numbers<[1], [0], [0], [1], [0, 0, 1, 1], [], []>} : vector<8x128xf32>, vector<128x128xf32>, vector<8x128xf32> -> vector<8x128xf32>
    %cst_20 = arith.constant 3.125000e-02 : f32
    %23 = vector.broadcast %cst_20 : f32 to vector<8x128xf32>
    %24 = arith.mulf %22, %23 : vector<8x128xf32>
    %cst_21 = arith.constant 9.99999974E-6 : f32
    %25 = vector.broadcast %cst_21 : f32 to vector<8x128xf32>
    %26 = arith.addf %24, %25 : vector<8x128xf32>
    %27 = math.rsqrt %26 : vector<8x128xf32>
    %28 = arith.mulf %20, %27 : vector<8x128xf32>
    %29 = vector.broadcast %4 : vector<1x128xf32> to vector<8x128xf32>
    %30 = arith.mulf %28, %29 : vector<8x128xf32>
    %31 = vector.broadcast %5 : vector<1x128xf32> to vector<8x128xf32>
    %32 = arith.addf %30, %31 : vector<8x128xf32>
    %c0_22 = arith.constant 0 : index
    %c0_23 = arith.constant 0 : index
    %33 = vector.load %arg10[%c0_22, %c0_23] : memref<8x128xf32, #tpu.memory_space<vmem>>, vector<8x128xf32>
    tpu.vector_store %arg10[%c0_22, %c0_23], %32 {strides = array<i32>} : memref<8x128xf32, #tpu.memory_space<vmem>>, vector<8x128xf32>,
    %c0_24 = arith.constant 0 : index
    %c0_25 = arith.constant 0 : index
    %34 = vector.load %arg2[%c0_24, %c0_25] : memref<8x128xf32, #tpu.memory_space<vmem>>, vector<8x128xf32>
    %cst_26 = arith.constant dense<0.000000e+00> : vector<8x256xf32>
    %35 = tpu.matmul %34, %0, %cst_26 {dimension_numbers = #tpu.dot_dimension_numbers<[1], [0], [0], [1], [0, 0, 1, 1], [], []>} : vector<8x128xf32>, vector<128x256xf32>, vector<8x256xf32> -> vector<8x256xf32>
    %36 = vector.broadcast %1 : vector<1x256xf32> to vector<8x256xf32>
    %37 = arith.addf %35, %36 : vector<8x256xf32>
    %cst_27 = arith.constant 0.000000e+00 : f32
    %38 = vector.broadcast %cst_27 : f32 to vector<8x256xf32>
    %39 = arith.maximumf %37, %38 : vector<8x256xf32>
    %cst_28 = arith.constant dense<0.000000e+00> : vector<8x128xf32>
    %40 = tpu.matmul %39, %2, %cst_28 {dimension_numbers = #tpu.dot_dimension_numbers<[1], [0], [0], [1], [0, 0, 1, 1], [], []>} : vector<8x256xf32>, vector<256x128xf32>, vector<8x128xf32> -> vector<8x128xf32>
    %41 = vector.broadcast %3 : vector<1x128xf32> to vector<8x128xf32>
    %42 = arith.addf %40, %41 : vector<8x128xf32>
    %43 = arith.addf %34, %42 : vector<8x128xf32>
    %cst_29 = arith.constant dense<0.000000e+00> : vector<8x128xf32>
    %44 = tpu.matmul %43, %6, %cst_29 {dimension_numbers = #tpu.dot_dimension_numbers<[1], [0], [0], [1], [0, 0, 1, 1], [], []>} : vector<8x128xf32>, vector<128x128xf32>, vector<8x128xf32> -> vector<8x128xf32>
    %cst_30 = arith.constant 3.125000e-02 : f32
    %45 = vector.broadcast %cst_30 : f32 to vector<8x128xf32>
    %46 = arith.mulf %44, %45 : vector<8x128xf32>
    %47 = arith.subf %43, %46 : vector<8x128xf32>
    %48 = arith.mulf %47, %47 : vector<8x128xf32>
    %cst_31 = arith.constant dense<0.000000e+00> : vector<8x128xf32>
    %49 = tpu.matmul %48, %6, %cst_31 {dimension_numbers = #tpu.dot_dimension_numbers<[1], [0], [0], [1], [0, 0, 1, 1], [], []>} : vector<8x128xf32>, vector<128x128xf32>, vector<8x128xf32> -> vector<8x128xf32>
    %cst_32 = arith.constant 3.125000e-02 : f32
    %50 = vector.broadcast %cst_32 : f32 to vector<8x128xf32>
    %51 = arith.mulf %49, %50 : vector<8x128xf32>
    %cst_33 = arith.constant 9.99999974E-6 : f32
    %52 = vector.broadcast %cst_33 : f32 to vector<8x128xf32>
    %53 = arith.addf %51, %52 : vector<8x128xf32>
    %54 = math.rsqrt %53 : vector<8x128xf32>
    %55 = arith.mulf %47, %54 : vector<8x128xf32>
    %56 = vector.broadcast %4 : vector<1x128xf32> to vector<8x128xf32>
    %57 = arith.mulf %55, %56 : vector<8x128xf32>
    %58 = vector.broadcast %5 : vector<1x128xf32> to vector<8x128xf32>
    %59 = arith.addf %57, %58 : vector<8x128xf32>
    %c0_34 = arith.constant 0 : index
    %c0_35 = arith.constant 0 : index
    %60 = vector.load %arg11[%c0_34, %c0_35] : memref<8x128xf32, #tpu.memory_space<vmem>>, vector<8x128xf32>
    tpu.vector_store %arg11[%c0_34, %c0_35], %59 {strides = array<i32>} : memref<8x128xf32, #tpu.memory_space<vmem>>, vector<8x128xf32>,
    return
  }
  func.func @transform_0(%arg0: i32) -> (i32, i32) {
    %c0_i32 = arith.constant 0 : i32
    %c0_i32_0 = arith.constant 0 : i32
    return %arg0, %c0_i32 : i32, i32
  }
  func.func @transform_1(%arg0: i32) -> (i32, i32) {
    %c0_i32 = arith.constant 0 : i32
    %c0_i32_0 = arith.constant 0 : i32
    return %arg0, %c0_i32 : i32, i32
  }
  func.func @transform_2(%arg0: i32) -> (i32, i32) {
    %c0_i32 = arith.constant 0 : i32
    %c0_i32_0 = arith.constant 0 : i32
    %c0_i32_1 = arith.constant 0 : i32
    return %c0_i32, %c0_i32_0 : i32, i32
  }
  func.func @transform_3(%arg0: i32) -> (i32, i32) {
    %c0_i32 = arith.constant 0 : i32
    %c0_i32_0 = arith.constant 0 : i32
    %c0_i32_1 = arith.constant 0 : i32
    return %c0_i32, %c0_i32_0 : i32, i32
  }
  func.func @transform_4(%arg0: i32) -> (i32, i32) {
    %c0_i32 = arith.constant 0 : i32
    %c0_i32_0 = arith.constant 0 : i32
    %c0_i32_1 = arith.constant 0 : i32
    return %c0_i32, %c0_i32_0 : i32, i32
  }
  func.func @transform_5(%arg0: i32) -> (i32, i32) {
    %c0_i32 = arith.constant 0 : i32
    %c0_i32_0 = arith.constant 0 : i32
    %c0_i32_1 = arith.constant 0 : i32
    return %c0_i32, %c0_i32_0 : i32, i32
  }
  func.func @transform_6(%arg0: i32) -> (i32, i32) {
    %c0_i32 = arith.constant 0 : i32
    %c0_i32_0 = arith.constant 0 : i32
    %c0_i32_1 = arith.constant 0 : i32
    return %c0_i32, %c0_i32_0 : i32, i32
  }
  func.func @transform_7(%arg0: i32) -> (i32, i32) {
    %c0_i32 = arith.constant 0 : i32
    %c0_i32_0 = arith.constant 0 : i32
    %c0_i32_1 = arith.constant 0 : i32
    return %c0_i32, %c0_i32_0 : i32, i32
  }
  func.func @transform_8(%arg0: i32) -> (i32, i32) {
    %c0_i32 = arith.constant 0 : i32
    %c0_i32_0 = arith.constant 0 : i32
    %c0_i32_1 = arith.constant 0 : i32
    return %c0_i32, %c0_i32_0 : i32, i32
  }
  func.func @transform_9(%arg0: i32) -> (i32, i32) {
    %c0_i32 = arith.constant 0 : i32
    %c0_i32_0 = arith.constant 0 : i32
    return %arg0, %c0_i32 : i32, i32
  }
  func.func @transform_10(%arg0: i32) -> (i32, i32) {
    %c0_i32 = arith.constant 0 : i32
    %c0_i32_0 = arith.constant 0 : i32
    return %arg0, %c0_i32 : i32, i32
  }
}

</mosaic_0001>

<bundles_post_ra>
// kernel: shallow_layer_forward.1
= control target key start
LH: loop header
LB: loop body
LE: loop exit
PB: predicated region body
PF: predicated region fallthrough
CT: control target
= control target key end

     0   :  { %16 = vsyncpa [#allocation3], 0  ;;  %s1708_s0 = inlined_call_operand.vmem [shape: f32[8,128], index: 0, kind: input, shape index: {}]   ;;  %s1709_s1 = inlined_call_operand.vmem [shape: f32[8,128], index: 1, kind: input, shape index: {}]   ;;  %s1710_s2 = inlined_call_operand.hbm [shape: f32[128,256], index: 2, kind: input, shape index: {}]   ;;  %s1711_s3 = inlined_call_operand.vmem [shape: f32[1,256], index: 3, kind: input, shape index: {}]   ;;  %s1712_s4 = inlined_call_operand.hbm [shape: f32[256,128], index: 4, kind: input, shape index: {}]   ;;  %s1713_s5 = inlined_call_operand.vmem [shape: f32[1,128], index: 5, kind: input, shape index: {}]   ;;  %s1714_s6 = inlined_call_operand.vmem [shape: f32[1,128], index: 6, kind: input, shape index: {}]   ;;  %s1715_s7 = inlined_call_operand.vmem [shape: f32[1,128], index: 7, kind: input, shape index: {}]   ;;  %s1716_s8 = inlined_call_operand.vmem [shape: f32[128,128], index: 8, kind: input, shape index: {}]   ;;  %s1717_s9 = inlined_call_operand.vmem [shape: f32[8,128], index: 9, kind: output, shape index: {0}]   ;;  %s1718_s10 = inlined_call_operand.vmem [shape: f32[8,128], index: 10, kind: output, shape index: {1}]  }
   0x1   :  { %17 = vsyncpa [#allocation5], 0  ;;  %s1112_s13 = smov [#allocation2]  }
   0x2   :  { %s27_s14 = sshll.u32 %s1112_s13, 4  ;;  %s28_s14 = int_to_ptr.vmem [resolvable:$true] %s27_s14 }
   0x3   :  { %s1076_s15 = scalar_lea.vmem %s28_s14, 4096  ;;  %p1081_p1 = scmp.lt.s32.totalorder %s28_s14, %s28_s14 }
   0x4   :  { %p1077_p0 = scmp.ne.s32.totalorder %s28_s14, %s1076_s15  ;;  %p1082_p2 = scmp.lt.s32.totalorder %s1076_s15, %s1076_s15 }
   0x6   :  { %p1083_p3 = por %p1082_p2, %p1081_p1 }
   0x8   :  { %p1084_p4 = pnand %p1083_p3, %p1077_p0 }
   0xa   :  { %1087 = shalt.err (!%p1084_p4)
}
   0xb   :  { %s1113_s16 = smov 256   ;;  %s1114_s17 = smov 16  }
   0xc   :  { %33 = dma.hbm_to_vmem [thread:$0]  %s1710_s2, 4096, %s28_s14, [#allocation3], %s1113_s16, %s1113_s16, %s1114_s17  }
   0xd   :  { %s1115_s20 = smov [#allocation4]  }
   0xe   :  { %s41_s21 = sshll.u32 %s1115_s20, 4  ;;  %s42_s21 = int_to_ptr.vmem [resolvable:$true] %s41_s21 }
   0xf   :  { %s1096_s22 = scalar_lea.vmem %s42_s21, 4096  ;;  %p1101_p6 = scmp.lt.s32.totalorder %s42_s21, %s42_s21 }
  0x10   :  { %p1097_p5 = scmp.ne.s32.totalorder %s42_s21, %s1096_s22  ;;  %p1102_p7 = scmp.lt.s32.totalorder %s1096_s22, %s1096_s22 }
  0x12   :  { %p1103_p8 = por %p1102_p7, %p1101_p6 }
  0x14   :  { %p1104_p9 = pnand %p1103_p8, %p1097_p5 }
  0x16   :  { %1107 = shalt.err (!%p1104_p9)
}
  0x17   :  { %s1116_s23 = smov 128   ;;  %s1117_s24 = smov 8  }
  0x18   :  { %47 = dma.hbm_to_vmem [thread:$0]  %s1712_s4, 4096, %s42_s21, [#allocation5], %s1116_s23, %s1116_s23, %s1117_s24  }
  0x19   :  { %1108 = dma.done.wait [#allocation3], 4096  }
  0x1a   :  { %1109 = vsyncadd [#allocation3], 4294963200 }
  0x1b   :  { %1110 = dma.done.wait [#allocation5], 4096  }
  0x1c   :  { %1111 = vsyncadd [#allocation5], 4294963200  ;;  %v1719_v0 = vmov 0.0   ;;  %v1182_v1 = vld [vmem:[#allocation2 + $0xf8] sm:$0xff]  ;;  %v1184_v2 = vld [vmem:[#allocation2 + $0xf0] sm:$0xff]  ;;  %vm1119_vm0 = vmmov 0  }
  0x1d   :  { %222 = vmatprep.mubr.f32.mxu0 %v1719_v0  ;;  %v1186_v3 = vld [vmem:[#allocation2 + $0xe8] sm:$0xff]  ;;  %158 = vmatprep.subr.mxu0 %v1182_v1  ;;  %v1189_v4 = vld [vmem:[#allocation2 + $0xe0] sm:$0xff]  ;;  %v1192_v5 = vld [vmem:[#allocation2 + $0xd8] sm:$0xff] }
  0x1e   :  { %159 = vmatpush1.msra.mxu0 %v1184_v2  ;;  %v1195_v6 = vld [vmem:[#allocation2 + $0xd0] sm:$0xff]  ;;  %v1198_v7 = vld [vmem:[#allocation2 + $0xc8] sm:$0xff]  ;;  %v1201_v8 = vld [vmem:[#allocation2 + $0xc0] sm:$0xff] }
  0x1f   :  { %160 = vmatprep.subr.mxu0 %v1186_v3  ;;  %v1204_v9 = vld [vmem:[#allocation2 + $0xb8] sm:$0xff]  ;;  %v1207_v10 = vld [vmem:[#allocation2 + $0xb0] sm:$0xff]  ;;  %v1210_v11 = vld [vmem:[#allocation2 + $0xa8] sm:$0xff] }
  0x20   :  { %161 = vmatpush1.msra.mxu0 %v1189_v4  ;;  %v1213_v12 = vld [vmem:[#allocation2 + $0xa0] sm:$0xff]  ;;  %v1216_v13 = vld [vmem:[#allocation2 + $0x98] sm:$0xff]  ;;  %v1218_v14 = vld [vmem:[#allocation2 + $0x90] sm:$0xff] }
  0x21   :  { %162 = vmatprep.subr.mxu0 %v1192_v5  ;;  %v1221_v15 = vld [vmem:[#allocation4 + $0xf8] sm:$0xff]  ;;  %v1225_v17 = vld [vmem:[#allocation4 + $0xf0] sm:$0xff]  ;;  %v1228_v18 = vld [vmem:[#allocation2 + $0x88] sm:$0xff] }
  0x22   :  { %163 = vmatpush1.msra.mxu0 %v1195_v6  ;;  %v1223_v16 = vld [vmem:[#allocation4 + $0x78] sm:$0xff]  ;;  %778 = vmatprep.subr.mxu1 %v1221_v15  ;;  %v1231_v19 = vld [vmem:[#allocation4 + $0x70] sm:$0xff]  ;;  %v1234_v20 = vld [vmem:[#allocation2 + $0x80] sm:$0xff] }
  0x23   :  { %164 = vmatprep.subr.mxu0 %v1198_v7  ;;  %779 = vmatpush3.msra.mxu1 %v1223_v16  ;;  %v1237_v21 = vld [vmem:[#allocation4 + $0xe8] sm:$0xff]  ;;  %v1240_v22 = vld [vmem:[#allocation2 + $0x78] sm:$0xff]  ;;  %v1246_v24 = vld [vmem:[#allocation2 + $0x70] sm:$0xff] }
  0x24   :  { %165 = vmatpush1.msra.mxu0 %v1201_v8  ;;  %780 = vmatprep.subr.mxu1 %v1225_v17  ;;  %v1243_v23 = vld [vmem:[#allocation4 + $0x68] sm:$0xff]  ;;  %v1249_v25 = vld [vmem:[#allocation4 + $0xe0] sm:$0xff]  ;;  %v1261_v29 = vld [vmem:[#allocation4 + $0xd8] sm:$0xff] }
  0x25   :  { %166 = vmatprep.subr.mxu0 %v1204_v9  ;;  %1748 = vst [vmem:[#allocation8_spill] sm:$0xff] %v1243_v23  ;;  %781 = vmatpush3.msra.mxu1 %v1231_v19  ;;  %1749 = vst [vmem:[#allocation9_spill] sm:$0xff] %v1249_v25  ;;  %v1252_v26 = vld [vmem:[#allocation2 + $0x68] sm:$0xff]  ;;  %v1255_v27 = vld [vmem:[#allocation4 + $0x60] sm:$0xff] }
  0x26   :  { %167 = vmatpush1.msra.mxu0 %v1207_v10  ;;  %782 = vmatprep.subr.mxu1 %v1237_v21  ;;  %1750 = vst [vmem:[#allocation10_spill] sm:$0xff] %v1255_v27  ;;  %v1258_v28 = vld [vmem:[#allocation2 + $0x60] sm:$0xff]  ;;  %1751 = vst [vmem:[#allocation11_spill] sm:$0xff] %v1261_v29  ;;  %v1264_v30 = vld [vmem:[#allocation2 + $0x58] sm:$0xff] }
  0x27   :  { %168 = vmatprep.subr.mxu0 %v1210_v11  ;;  %783 = vmatpush3.msra.mxu1 %v1243_v23  ;;  %v1267_v31 = vld [vmem:[#allocation4 + $0x58] sm:$0xff]  ;;  %v1270_v32 = vld [vmem:[#allocation2 + $0x50] sm:$0xff]  ;;  %v1276_v34 = vld [vmem:[#allocation2 + $0x48] sm:$0xff] }
  0x28   :  { %169 = vmatpush1.msra.mxu0 %v1213_v12  ;;  %784 = vmatprep.subr.mxu1 %v1249_v25  ;;  %1752 = vst [vmem:[#allocation12_spill] sm:$0xff] %v1267_v31  ;;  %v1273_v33 = vld [vmem:[#allocation4 + $0xd0] sm:$0xff]  ;;  %v1282_v36 = vld [vmem:[#allocation2 + $0x40] sm:$0xff]  ;;  %v1285_v37 = vld [vmem:[#allocation4 + $0xc8] sm:$0xff] }
  0x29   :  { %170 = vmatprep.subr.mxu0 %v1216_v13  ;;  %785 = vmatpush3.msra.mxu1 %v1255_v27  ;;  %1753 = vst [vmem:[#allocation13_spill] sm:$0xff] %v1273_v33  ;;  %v1279_v35 = vld [vmem:[#allocation4 + $0x50] sm:$0xff]  ;;  %1755 = vst [vmem:[#allocation15_spill] sm:$0xff] %v1285_v37  ;;  %v1288_v38 = vld [vmem:[#allocation2 + $0x38] sm:$0xff] }
  0x2a   :  { %171 = vmatpush1.msra.mxu0 %v1218_v14  ;;  %786 = vmatprep.subr.mxu1 %v1261_v29  ;;  %1754 = vst [vmem:[#allocation14_spill] sm:$0xff] %v1279_v35  ;;  %v1291_v39 = vld [vmem:[#allocation4 + $0x48] sm:$0xff]  ;;  %v1294_v40 = vld [vmem:[#allocation2 + $0x30] sm:$0xff]  ;;  %v1297_v41 = vld [vmem:[#allocation4 + $0xc0] sm:$0xff] }
  0x2b   :  { %172 = vmatprep.subr.mxu0 %v1228_v18  ;;  %787 = vmatpush3.msra.mxu1 %v1267_v31  ;;  %1756 = vst [vmem:[#allocation16_spill] sm:$0xff] %v1291_v39  ;;  %1757 = vst [vmem:[#allocation17_spill] sm:$0xff] %v1297_v41  ;;  %v1300_v42 = vld [vmem:[#allocation2 + $0x28] sm:$0xff]  ;;  %v1303_v43 = vld [vmem:[#allocation4 + $0x40] sm:$0xff] }
  0x2c   :  { %173 = vmatpush1.msra.mxu0 %v1234_v20  ;;  %788 = vmatprep.subr.mxu1 %v1273_v33  ;;  %1758 = vst [vmem:[#allocation18_spill] sm:$0xff] %v1303_v43  ;;  %v1306_v44 = vld [vmem:[#allocation2 + $0x20] sm:$0xff]  ;;  %v1309_v45 = vld [vmem:[#allocation4 + $0xb8] sm:$0xff]  ;;  %v1318_v48 = vld [vmem:[#allocation2 + $0x10] sm:$0xff] }
  0x2d   :  { %174 = vmatprep.subr.mxu0 %v1240_v22  ;;  %789 = vmatpush3.msra.mxu1 %v1279_v35  ;;  %1759 = vst [vmem:[#allocation19_spill] sm:$0xff] %v1309_v45  ;;  %v1312_v46 = vld [vmem:[#allocation2 + $0x18] sm:$0xff]  ;;  %v1321_v49 = vld [vmem:[#allocation4 + $0xb0] sm:$0xff]  ;;  %v1324_v50 = vld [vmem:[#allocation2 + $0x8] sm:$0xff] }
  0x2e   :  { %175 = vmatpush1.msra.mxu0 %v1246_v24  ;;  %790 = vmatprep.subr.mxu1 %v1285_v37  ;;  %v1315_v47 = vld [vmem:[#allocation4 + $0x38] sm:$0xff]  ;;  %1761 = vst [vmem:[#allocation21_spill] sm:$0xff] %v1321_v49  ;;  %v1327_v51 = vld [vmem:[#allocation4 + $0x30] sm:$0xff]  ;;  %v1330_v52 = vld [vmem:[#allocation2] sm:$0xff] }
  0x2f   :  { %176 = vmatprep.subr.mxu0 %v1252_v26  ;;  %791 = vmatpush3.msra.mxu1 %v1291_v39  ;;  %1760 = vst [vmem:[#allocation20_spill] sm:$0xff] %v1315_v47  ;;  %1762 = vst [vmem:[#allocation22_spill] sm:$0xff] %v1327_v51  ;;  %v1333_v53 = vld [vmem:[#allocation4 + $0xa8] sm:$0xff]  ;;  %v1339_v54 = vld [vmem:[%s1708_s0] sm:$0xff] }
  0x30   :  { %177 = vmatpush1.msra.mxu0 %v1258_v28  ;;  %792 = vmatprep.subr.mxu1 %v1297_v41  ;;  %1763 = vst [vmem:[#allocation23_spill] sm:$0xff] %v1333_v53  ;;  %v1342_v55 = vld [vmem:[#allocation4 + $0x28] sm:$0xff]  ;;  %v1346_v56 = vld [vmem:[#allocation4 + $0xa0] sm:$0xff]  ;;  %v1357_v58 = vld [vmem:[#allocation4 + $0x98] sm:$0xff] }
  0x31   :  { %178 = vmatprep.subr.mxu0 %v1264_v30  ;;  %793 = vmatpush3.msra.mxu1 %v1303_v43  ;;  %1764 = vst [vmem:[#allocation24_spill] sm:$0xff] %v1342_v55  ;;  %1765 = vst [vmem:[#allocation25_spill] sm:$0xff] %v1346_v56  ;;  %v1350_v57 = vld [vmem:[#allocation4 + $0x20] sm:$0xff]  ;;  %v1360_v59 = vld [vmem:[#allocation4 + $0x18] sm:$0xff] }
  0x32   :  { %179 = vmatpush1.msra.mxu0 %v1270_v32  ;;  %794 = vmatprep.subr.mxu1 %v1309_v45  ;;  %1766 = vst [vmem:[#allocation26_spill] sm:$0xff] %v1350_v57  ;;  %1767 = vst [vmem:[#allocation27_spill] sm:$0xff] %v1357_v58  ;;  %v1363_v60 = vld [vmem:[#allocation4 + $0x90] sm:$0xff]  ;;  %v1369_v62 = vld [vmem:[#allocation4 + $0x88] sm:$0xff] }
  0x33   :  { %180 = vmatprep.subr.mxu0 %v1276_v34  ;;  %795 = vmatpush3.msra.mxu1 %v1315_v47  ;;  %1768 = vst [vmem:[#allocation28_spill] sm:$0xff] %v1360_v59  ;;  %1769 = vst [vmem:[#allocation29_spill] sm:$0xff] %v1363_v60  ;;  %v1366_v61 = vld [vmem:[#allocation4 + $0x10] sm:$0xff]  ;;  %v1371_v63 = vld [vmem:[#allocation4 + $0x8] sm:$0xff]  ;;  %v148_v47 = vlaneseq }
  0x34   :  { %181 = vmatpush1.msra.mxu0 %v1282_v36  ;;  %796 = vmatprep.subr.mxu1 %v1321_v49  ;;  %1770 = vst [vmem:[#allocation30_spill] sm:$0xff] %v1366_v61  ;;  %1771 = vst [vmem:[#allocation31_spill] sm:$0xff] %v1369_v62  ;;  %v1460_v49 = vld [vmem:[%s1716_s8 + $0x20] sm:$0xff] }
  0x35   :  { %182 = vmatprep.subr.mxu0 %v1288_v38  ;;  %797 = vmatpush3.msra.mxu1 %v1327_v51  ;;  %1772 = vst [vmem:[#allocation32_spill] sm:$0xff] %v1371_v63  ;;  %v1453_v51 = vld [vmem:[%s1716_s8 + $0x28] sm:$0xff]  ;;  %v149_v45 = vshrl.u32 %v148_v47, 7  ;;  %v94_v41 = vld [vmem:[%s1711_s3] sm:$0x3] }
  0x36   :  { %183 = vmatpush1.msra.mxu0 %v1294_v40  ;;  %798 = vmatprep.subr.mxu1 %v1333_v53  ;;  %v1446_v53 = vld [vmem:[%s1716_s8 + $0x30] sm:$0xff] }
  0x37   :  { %184 = vmatprep.subr.mxu0 %v1300_v42  ;;  %799 = vmatpush3.msra.mxu1 %v1342_v55  ;;  %v1439_v55 = vld [vmem:[%s1716_s8 + $0x38] sm:$0xff]  ;;  %v150_v43 = vsub.s32 0, %v149_v45  ;;  %v154_v39 = vsub.s32 1, %v149_v45 }
  0x38   :  { %185 = vmatpush1.msra.mxu0 %v1306_v44  ;;  %800 = vmatprep.subr.mxu1 %v1346_v56  ;;  %v1432_v56 = vld [vmem:[%s1716_s8 + $0x40] sm:$0xff] }
  0x39   :  { %186 = vmatprep.subr.mxu0 %v1312_v46  ;;  %801 = vmatpush3.msra.mxu1 %v1350_v57  ;;  %v1425_v57 = vld [vmem:[%s1716_s8 + $0x48] sm:$0xff]  ;;  %v1469_v37 = vrot.slane %v94_v41, %v150_v43  ;;  %v1471_v35 = vrot.slane %v94_v41, %v154_v39 }
  0x3a   :  { %187 = vmatpush1.msra.mxu0 %v1318_v48  ;;  %802 = vmatprep.subr.mxu1 %v1357_v58  ;;  %v1376_v58 = vld [vmem:[#allocation4] sm:$0xff] }
  0x3b   :  { %188 = vmatprep.subr.mxu0 %v1324_v50  ;;  %803 = vmatpush3.msra.mxu1 %v1360_v59  ;;  %1774 = vst [vmem:[#allocation34_spill] sm:$0xff] %v1376_v58  ;;  %v1775_v59 = vmov 0.0  }
  0x3c   :  { %189 = vmatpush1.msra.mxu0 %v1330_v52  ;;  %804 = vmatprep.subr.mxu1 %v1363_v60  ;;  %v1389_v60 = vld [vmem:[%s1716_s8 + $0x70] sm:$0xff]  ;;  %v1800_v47 = vld [vmem:[#allocation32_spill] sm:$0xff] }
  0x3d   :  { %223 = vmatmul.mubr.f32.vlgmr.msra.gmra.mxu0 %v1339_v54  ;;  %916 = vmatprep.subr.mxu0 %v1719_v0  ;;  %v1373_v0 = vld [vmem:[#allocation4 + $0x80] sm:$0xff] }
  0x3e   :  { %805 = vmatpush3.msra.mxu1 %v1366_v61  ;;  %1773 = vst [vmem:[#allocation33_spill] sm:$0xff] %v1373_v0  ;;  %v1384_v61 = vld [vmem:[%s1716_s8 + $0x78] sm:$0xff]  ;;  %948 = vmatprep.mubr.msk.f32.mxu0 %vm1119_vm0, %v1775_v59 }
  0x3f   :  { %806 = vmatprep.subr.mxu1 %v1369_v62  ;;  %917 = vmatpush3.msra.mxu0 %v1384_v61  ;;  %v1418_v62 = vld [vmem:[%s1716_s8 + $0x50] sm:$0xff] }
  0x40   :  { %807 = vmatpush3.msra.mxu1 %v1371_v63  ;;  %918 = vmatprep.subr.mxu0 %v1775_v59  ;;  %v1411_v63 = vld [vmem:[%s1716_s8 + $0x58] sm:$0xff] }
  0x41   :  { %808 = vmatprep.subr.mxu1 %v1373_v0  ;;  %919 = vmatpush3.msra.mxu0 %v1389_v60  ;;  %v1404_v0 = vld [vmem:[%s1716_s8 + $0x60] sm:$0xff] }
  0x42   :  { %809 = vmatpush3.msra.mxu1 %v1376_v58  ;;  %v1397_v58 = vld [vmem:[%s1716_s8 + $0x68] sm:$0xff]  ;;  %920 = vmatprep.subr.mxu0 %v1775_v59 }
  0x43   :  { %951 = vmatprep.subr.mxu1 %v1775_v59  ;;  %921 = vmatpush3.msra.mxu0 %v1397_v58 }
  0x44   :  { %922 = vmatprep.subr.mxu0 %v1775_v59 }
  0x45   :  { %923 = vmatpush3.msra.mxu0 %v1404_v0 }
  0x46   :  { %924 = vmatprep.subr.mxu0 %v1775_v59 }
  0x47   :  { %925 = vmatpush3.msra.mxu0 %v1411_v63 }
  0x48   :  { %926 = vmatprep.subr.mxu0 %v1775_v59 }
  0x49   :  { %927 = vmatpush3.msra.mxu0 %v1418_v62 }
  0x4a   :  { %928 = vmatprep.subr.mxu0 %v1775_v59 }
  0x4b   :  { %929 = vmatpush3.msra.mxu0 %v1425_v57 }
  0x4c   :  { %930 = vmatprep.subr.mxu0 %v1775_v59 }
  0x4d   :  { %931 = vmatpush3.msra.mxu0 %v1432_v56 }
  0x4e   :  { %932 = vmatprep.subr.mxu0 %v1775_v59 }
  0x4f   :  { %933 = vmatpush3.msra.mxu0 %v1439_v55 }
  0x50   :  { %934 = vmatprep.subr.mxu0 %v1775_v59 }
  0x51   :  { %935 = vmatpush3.msra.mxu0 %v1446_v53 }
  0x52   :  { %936 = vmatprep.subr.mxu0 %v1775_v59 }
  0x53   :  { %937 = vmatpush3.msra.mxu0 %v1453_v51 }
  0x54   :  { %938 = vmatprep.subr.mxu0 %v1775_v59 }
  0x55   :  { %939 = vmatpush3.msra.mxu0 %v1460_v49 }
  0x56   :  { %940 = vmatprep.subr.mxu0 %v1775_v59 }
  0xfd   :  { %v224_v33 = vpop.f32.mrf.mxu0 }
  0xfe   :  { %v225_v31 = vadd.f32 %v224_v33, %v1469_v37  ;;  %v1542_v33 = vld [vmem:[%s1713_s5] ss:$0 sm:$0xff] }
  0xff   :  { %v226_v29 = vpop.f32.mrf.mxu0 }
 0x100   :  { %v227_v27 = vadd.f32 %v226_v29, %v1471_v35  ;;  %v229_v23 = vmax.f32 %v225_v31, 0.0  ;;  %v1528_v29 = vld [vmem:[%s1716_s8] sm:$0xff] }
 0x102   :  { %v230_v25 = vmax.f32 %v227_v27, 0.0  ;;  %v1519_v27 = vld [vmem:[%s1716_s8 + $0x8] sm:$0xff] }
 0x104   :  { %301 = vmatprep.mubr.f32.mxu1 %v230_v25  ;;  %v1510_v25 = vld [vmem:[%s1716_s8 + $0x10] sm:$0xff] }
 0x105   :  { %302 = vmatmul.mubr.f32.vlgmr.msra.gmra.mxu1 %v229_v23  ;;  %v1502_v23 = vld [vmem:[%s1716_s8 + $0x18] sm:$0xff] }
 0x106   :  { %952 = vmatpush3.msra.mxu1 %v1384_v61  ;;  %941 = vmatpush3.msra.mxu0 %v1502_v23 }
 0x107   :  { %953 = vmatprep.subr.mxu1 %v1775_v59  ;;  %942 = vmatprep.subr.mxu0 %v1775_v59 }
 0x108   :  { %954 = vmatpush3.msra.mxu1 %v1389_v60  ;;  %943 = vmatpush3.msra.mxu0 %v1510_v25 }
 0x109   :  { %955 = vmatprep.subr.mxu1 %v1775_v59  ;;  %944 = vmatprep.subr.mxu0 %v1775_v59 }
 0x10a   :  { %956 = vmatpush3.msra.mxu1 %v1397_v58  ;;  %945 = vmatpush3.msra.mxu0 %v1519_v27 }
 0x10b   :  { %957 = vmatprep.subr.mxu1 %v1775_v59  ;;  %946 = vmatprep.subr.mxu0 %v1775_v59 }
 0x10c   :  { %958 = vmatpush3.msra.mxu1 %v1404_v0  ;;  %947 = vmatpush3.msra.mxu0 %v1528_v29 }
 0x10d   :  { %959 = vmatprep.subr.mxu1 %v1775_v59  ;;  %471 = vmatprep.subr.mxu0 %v1182_v1  ;;  %v1582_v1 = vld [vmem:[%s1709_s1] sm:$0xff] }
 0x10e   :  { %960 = vmatpush3.msra.mxu1 %v1411_v63  ;;  %983 = vmatprep.mubr.msk.f32.mxu1 %vm1119_vm0, %v1775_v59 }
 0x10f   :  { %961 = vmatprep.subr.mxu1 %v1775_v59 }
 0x110   :  { %962 = vmatpush3.msra.mxu1 %v1418_v62 }
 0x111   :  { %963 = vmatprep.subr.mxu1 %v1775_v59 }
 0x112   :  { %964 = vmatpush3.msra.mxu1 %v1425_v57 }
 0x113   :  { %965 = vmatprep.subr.mxu1 %v1775_v59 }
 0x114   :  { %966 = vmatpush3.msra.mxu1 %v1432_v56 }
 0x115   :  { %967 = vmatprep.subr.mxu1 %v1775_v59 }
 0x116   :  { %968 = vmatpush3.msra.mxu1 %v1439_v55 }
 0x117   :  { %969 = vmatprep.subr.mxu1 %v1775_v59 }
 0x118   :  { %970 = vmatpush3.msra.mxu1 %v1446_v53 }
 0x119   :  { %971 = vmatprep.subr.mxu1 %v1775_v59 }
 0x11a   :  { %972 = vmatpush3.msra.mxu1 %v1453_v51 }
 0x11b   :  { %973 = vmatprep.subr.mxu1 %v1775_v59 }
 0x11c   :  { %974 = vmatpush3.msra.mxu1 %v1460_v49 }
 0x11d   :  { %975 = vmatprep.subr.mxu1 %v1775_v59 }
 0x11e   :  { %976 = vmatpush3.msra.mxu1 %v1502_v23 }
 0x11f   :  { %977 = vmatprep.subr.mxu1 %v1775_v59 }
 0x120   :  { %978 = vmatpush3.msra.mxu1 %v1510_v25 }
 0x121   :  { %979 = vmatprep.subr.mxu1 %v1775_v59 }
 0x122   :  { %980 = vmatpush3.msra.mxu1 %v1519_v27 }
 0x123   :  { %981 = vmatprep.subr.mxu1 %v1775_v59 }
 0x124   :  { %982 = vmatpush3.msra.mxu1 %v1528_v29 }
 0x125   :  { %847 = vmatprep.subr.mxu1 %v1221_v15  ;;  %v1784_v15 = vld [vmem:[#allocation16_spill] sm:$0xff] }
 0x1c5   :  { %v810_v31 = vpop.f32.mrf.mxu1 }
 0x1c7   :  { %v811_v39 = vpop.f32.mrf.mxu1 }
 0x1c8   :  { %v812_v41 = vadd.f32 %v811_v39, %v810_v31 }
 0x1ca   :  { %v304_v43 = vadd.f32 %v812_v41, %v1542_v33 }
 0x1cc   :  { %v1546_v45 = vadd.f32 %v304_v43, %v1339_v54  ;;  %v1802_v54 = vld [vmem:[#allocation34_spill] sm:$0xff] }
 0x1ce   :  { %949 = vmatmul.mubr.f32.vlgmr.msra.gmra.mxu0 %v1546_v45 }
 0x1cf   :  { %472 = vmatpush1.msra.mxu0 %v1184_v2  ;;  %535 = vmatprep.mubr.f32.mxu0 %v1775_v59 }
 0x1d0   :  { %473 = vmatprep.subr.mxu0 %v1186_v3 }
 0x1d1   :  { %474 = vmatpush1.msra.mxu0 %v1189_v4 }
 0x1d2   :  { %475 = vmatprep.subr.mxu0 %v1192_v5 }
 0x1d3   :  { %476 = vmatpush1.msra.mxu0 %v1195_v6 }
 0x1d4   :  { %477 = vmatprep.subr.mxu0 %v1198_v7  ;;  %v1776_v7 = vld [vmem:[#allocation8_spill] sm:$0xff] }
 0x1d5   :  { %478 = vmatpush1.msra.mxu0 %v1201_v8  ;;  %v1777_v8 = vld [vmem:[#allocation9_spill] sm:$0xff] }
 0x1d6   :  { %479 = vmatprep.subr.mxu0 %v1204_v9  ;;  %v1778_v9 = vld [vmem:[#allocation10_spill] sm:$0xff] }
 0x1d7   :  { %480 = vmatpush1.msra.mxu0 %v1207_v10  ;;  %v1779_v10 = vld [vmem:[#allocation11_spill] sm:$0xff] }
 0x1d8   :  { %481 = vmatprep.subr.mxu0 %v1210_v11  ;;  %v1780_v11 = vld [vmem:[#allocation12_spill] sm:$0xff] }
 0x1d9   :  { %482 = vmatpush1.msra.mxu0 %v1213_v12  ;;  %v1781_v12 = vld [vmem:[#allocation13_spill] sm:$0xff] }
 0x1da   :  { %483 = vmatprep.subr.mxu0 %v1216_v13  ;;  %v1782_v13 = vld [vmem:[#allocation14_spill] sm:$0xff] }
 0x1db   :  { %484 = vmatpush1.msra.mxu0 %v1218_v14  ;;  %v1783_v14 = vld [vmem:[#allocation15_spill] sm:$0xff] }
 0x1dc   :  { %485 = vmatprep.subr.mxu0 %v1228_v18  ;;  %v1787_v18 = vld [vmem:[#allocation19_spill] sm:$0xff] }
 0x1dd   :  { %486 = vmatpush1.msra.mxu0 %v1234_v20  ;;  %v1789_v20 = vld [vmem:[#allocation21_spill] sm:$0xff] }
 0x1de   :  { %487 = vmatprep.subr.mxu0 %v1240_v22  ;;  %v1791_v22 = vld [vmem:[#allocation23_spill] sm:$0xff] }
 0x1df   :  { %488 = vmatpush1.msra.mxu0 %v1246_v24  ;;  %v1792_v24 = vld [vmem:[#allocation24_spill] sm:$0xff] }
 0x1e0   :  { %489 = vmatprep.subr.mxu0 %v1252_v26  ;;  %v1793_v26 = vld [vmem:[#allocation25_spill] sm:$0xff] }
 0x1e1   :  { %490 = vmatpush1.msra.mxu0 %v1258_v28  ;;  %v1794_v28 = vld [vmem:[#allocation26_spill] sm:$0xff] }
 0x1e2   :  { %491 = vmatprep.subr.mxu0 %v1264_v30  ;;  %v1795_v30 = vld [vmem:[#allocation27_spill] sm:$0xff] }
 0x1e3   :  { %492 = vmatpush1.msra.mxu0 %v1270_v32 }
 0x1e4   :  { %493 = vmatprep.subr.mxu0 %v1276_v34  ;;  %v1796_v34 = vld [vmem:[#allocation28_spill] sm:$0xff] }
 0x1e5   :  { %494 = vmatpush1.msra.mxu0 %v1282_v36  ;;  %v1797_v36 = vld [vmem:[#allocation29_spill] sm:$0xff] }
 0x1e6   :  { %495 = vmatprep.subr.mxu0 %v1288_v38 }
 0x1e7   :  { %496 = vmatpush1.msra.mxu0 %v1294_v40 }
 0x1e8   :  { %497 = vmatprep.subr.mxu0 %v1300_v42  ;;  %v1798_v42 = vld [vmem:[#allocation30_spill] sm:$0xff] }
 0x1e9   :  { %498 = vmatpush1.msra.mxu0 %v1306_v44 }
 0x1ea   :  { %499 = vmatprep.subr.mxu0 %v1312_v46  ;;  %v1799_v46 = vld [vmem:[#allocation31_spill] sm:$0xff] }
 0x1eb   :  { %500 = vmatpush1.msra.mxu0 %v1318_v48 }
 0x1ec   :  { %501 = vmatprep.subr.mxu0 %v1324_v50  ;;  %v1801_v50 = vld [vmem:[#allocation33_spill] sm:$0xff] }
 0x1ed   :  { %502 = vmatpush1.msra.mxu0 %v1330_v52 }
 0x1ee   :  { %536 = vmatmul.mubr.f32.vlgmr.msra.gmra.mxu0 %v1582_v1  ;;  %986 = vmatprep.subr.mxu0 %v1775_v59 }
 0x1ef   :  { %987 = vmatpush3.msra.mxu0 %v1384_v61  ;;  %1018 = vmatprep.mubr.msk.f32.mxu0 %vm1119_vm0, %v1775_v59 }
 0x1f0   :  { %988 = vmatprep.subr.mxu0 %v1775_v59 }
 0x1f1   :  { %989 = vmatpush3.msra.mxu0 %v1389_v60 }
 0x1f2   :  { %990 = vmatprep.subr.mxu0 %v1775_v59 }
 0x1f3   :  { %991 = vmatpush3.msra.mxu0 %v1397_v58 }
 0x1f4   :  { %992 = vmatprep.subr.mxu0 %v1775_v59 }
 0x1f5   :  { %993 = vmatpush3.msra.mxu0 %v1404_v0 }
 0x1f6   :  { %994 = vmatprep.subr.mxu0 %v1775_v59 }
 0x1f7   :  { %995 = vmatpush3.msra.mxu0 %v1411_v63 }
 0x1f8   :  { %996 = vmatprep.subr.mxu0 %v1775_v59 }
 0x1f9   :  { %997 = vmatpush3.msra.mxu0 %v1418_v62 }
 0x1fa   :  { %998 = vmatprep.subr.mxu0 %v1775_v59 }
 0x1fb   :  { %999 = vmatpush3.msra.mxu0 %v1425_v57 }
 0x1fc   :  { %1000 = vmatprep.subr.mxu0 %v1775_v59 }
 0x1fd   :  { %1001 = vmatpush3.msra.mxu0 %v1432_v56 }
 0x1fe   :  { %1002 = vmatprep.subr.mxu0 %v1775_v59 }
 0x1ff   :  { %1003 = vmatpush3.msra.mxu0 %v1439_v55 }
 0x200   :  { %1004 = vmatprep.subr.mxu0 %v1775_v59 }
 0x201   :  { %1005 = vmatpush3.msra.mxu0 %v1446_v53 }
 0x202   :  { %1006 = vmatprep.subr.mxu0 %v1775_v59 }
 0x203   :  { %1007 = vmatpush3.msra.mxu0 %v1453_v51 }
 0x204   :  { %1008 = vmatprep.subr.mxu0 %v1775_v59 }
 0x205   :  { %1009 = vmatpush3.msra.mxu0 %v1460_v49 }
 0x206   :  { %1010 = vmatprep.subr.mxu0 %v1775_v59 }
 0x207   :  { %1011 = vmatpush3.msra.mxu0 %v1502_v23 }
 0x208   :  { %1012 = vmatprep.subr.mxu0 %v1775_v59 }
 0x209   :  { %1013 = vmatpush3.msra.mxu0 %v1510_v25 }
 0x20a   :  { %1014 = vmatprep.subr.mxu0 %v1775_v59 }
 0x20b   :  { %1015 = vmatpush3.msra.mxu0 %v1519_v27 }
 0x20c   :  { %1016 = vmatprep.subr.mxu0 %v1775_v59 }
 0x20d   :  { %1017 = vmatpush3.msra.mxu0 %v1528_v29 }
 0x28e   :  { %v374_v2 = vpop.f32.mrf.mxu0 }
 0x28f   :  { %v378_v3 = vmul.f32 0.03125, %v374_v2 }
 0x290   :  { %v950_v4 = vpop.f32.mrf.mxu0 }
 0x291   :  { %v1622_v5 = vsub.f32 %v1546_v45, %v378_v3 }
 0x293   :  { %v380_v6 = vmul.f32 %v1622_v5, %v1622_v5 }
 0x295   :  { %984 = vmatmul.mubr.f32.vlgmr.msra.gmra.mxu1 %v380_v6 }
 0x296   :  { %848 = vmatpush3.msra.mxu1 %v1223_v16  ;;  %v1785_v16 = vld [vmem:[#allocation17_spill] sm:$0xff] }
 0x297   :  { %849 = vmatprep.subr.mxu1 %v1225_v17  ;;  %v1786_v17 = vld [vmem:[#allocation18_spill] sm:$0xff] }
 0x298   :  { %850 = vmatpush3.msra.mxu1 %v1231_v19  ;;  %v1788_v19 = vld [vmem:[#allocation20_spill] sm:$0xff] }
 0x299   :  { %851 = vmatprep.subr.mxu1 %v1237_v21  ;;  %v1790_v21 = vld [vmem:[#allocation22_spill] sm:$0xff] }
 0x29a   :  { %852 = vmatpush3.msra.mxu1 %v1776_v7 }
 0x29b   :  { %853 = vmatprep.subr.mxu1 %v1777_v8 }
 0x29c   :  { %854 = vmatpush3.msra.mxu1 %v1778_v9 }
 0x29d   :  { %855 = vmatprep.subr.mxu1 %v1779_v10 }
 0x29e   :  { %856 = vmatpush3.msra.mxu1 %v1780_v11 }
 0x29f   :  { %857 = vmatprep.subr.mxu1 %v1781_v12 }
 0x2a0   :  { %858 = vmatpush3.msra.mxu1 %v1782_v13 }
 0x2a1   :  { %859 = vmatprep.subr.mxu1 %v1783_v14 }
 0x2a2   :  { %860 = vmatpush3.msra.mxu1 %v1784_v15 }
 0x2a3   :  { %861 = vmatprep.subr.mxu1 %v1785_v16 }
 0x2a4   :  { %862 = vmatpush3.msra.mxu1 %v1786_v17 }
 0x2a5   :  { %863 = vmatprep.subr.mxu1 %v1787_v18 }
 0x2a6   :  { %864 = vmatpush3.msra.mxu1 %v1788_v19 }
 0x2a7   :  { %865 = vmatprep.subr.mxu1 %v1789_v20 }
 0x2a8   :  { %866 = vmatpush3.msra.mxu1 %v1790_v21 }
 0x2a9   :  { %867 = vmatprep.subr.mxu1 %v1791_v22 }
 0x2aa   :  { %868 = vmatpush3.msra.mxu1 %v1792_v24 }
 0x2ab   :  { %869 = vmatprep.subr.mxu1 %v1793_v26 }
 0x2ac   :  { %870 = vmatpush3.msra.mxu1 %v1794_v28 }
 0x2ad   :  { %871 = vmatprep.subr.mxu1 %v1795_v30 }
 0x2ae   :  { %v537_v32 = vpop.f32.mrf.mxu0  ;;  %872 = vmatpush3.msra.mxu1 %v1796_v34 }
 0x2af   :  { %873 = vmatprep.subr.mxu1 %v1797_v36  ;;  %v538_v38 = vadd.f32 %v537_v32, %v1469_v37 }
 0x2b0   :  { %v539_v40 = vpop.f32.mrf.mxu0  ;;  %874 = vmatpush3.msra.mxu1 %v1798_v42 }
 0x2b1   :  { %v540_v44 = vadd.f32 %v539_v40, %v1471_v35  ;;  %875 = vmatprep.subr.mxu1 %v1799_v46  ;;  %v542_v52 = vmax.f32 %v538_v38, 0.0 }
 0x2b2   :  { %876 = vmatpush3.msra.mxu1 %v1800_v47 }
 0x2b3   :  { %v543_v48 = vmax.f32 %v540_v44, 0.0  ;;  %877 = vmatprep.subr.mxu1 %v1801_v50 }
 0x2b4   :  { %878 = vmatpush3.msra.mxu1 %v1802_v54 }
 0x2b5   :  { %608 = vmatprep.mubr.f32.mxu1 %v543_v48  ;;  %1021 = vmatprep.subr.mxu1 %v1775_v59 }
 0x2b6   :  { %609 = vmatmul.mubr.f32.vlgmr.msra.gmra.mxu1 %v542_v52 }
 0x2b7   :  { %1022 = vmatpush3.msra.mxu1 %v1384_v61  ;;  %1053 = vmatprep.mubr.msk.f32.mxu1 %vm1119_vm0, %v1775_v59 }
 0x2b8   :  { %1023 = vmatprep.subr.mxu1 %v1775_v59 }
 0x2b9   :  { %1024 = vmatpush3.msra.mxu1 %v1389_v60 }
 0x2ba   :  { %1025 = vmatprep.subr.mxu1 %v1775_v59 }
 0x2bb   :  { %1026 = vmatpush3.msra.mxu1 %v1397_v58 }
 0x2bc   :  { %1027 = vmatprep.subr.mxu1 %v1775_v59 }
 0x2bd   :  { %1028 = vmatpush3.msra.mxu1 %v1404_v0 }
 0x2be   :  { %1029 = vmatprep.subr.mxu1 %v1775_v59 }
 0x2bf   :  { %1030 = vmatpush3.msra.mxu1 %v1411_v63 }
 0x2c0   :  { %1031 = vmatprep.subr.mxu1 %v1775_v59 }
 0x2c1   :  { %1032 = vmatpush3.msra.mxu1 %v1418_v62 }
 0x2c2   :  { %1033 = vmatprep.subr.mxu1 %v1775_v59 }
 0x2c3   :  { %1034 = vmatpush3.msra.mxu1 %v1425_v57 }
 0x2c4   :  { %1035 = vmatprep.subr.mxu1 %v1775_v59 }
 0x2c5   :  { %1036 = vmatpush3.msra.mxu1 %v1432_v56  ;;  %v777_v56 = vld [vmem:[%s1715_s7] ss:$0 sm:$0xff] }
 0x2c6   :  { %1037 = vmatprep.subr.mxu1 %v1775_v59 }
 0x2c7   :  { %1038 = vmatpush3.msra.mxu1 %v1439_v55 }
 0x2c8   :  { %1039 = vmatprep.subr.mxu1 %v1775_v59 }
 0x2c9   :  { %1040 = vmatpush3.msra.mxu1 %v1446_v53  ;;  %v776_v53 = vld [vmem:[%s1714_s6] ss:$0 sm:$0xff] }
 0x2ca   :  { %1041 = vmatprep.subr.mxu1 %v1775_v59 }
 0x2cb   :  { %1042 = vmatpush3.msra.mxu1 %v1453_v51 }
 0x2cc   :  { %1043 = vmatprep.subr.mxu1 %v1775_v59 }
 0x2cd   :  { %1044 = vmatpush3.msra.mxu1 %v1460_v49 }
 0x2ce   :  { %1045 = vmatprep.subr.mxu1 %v1775_v59 }
 0x2cf   :  { %1046 = vmatpush3.msra.mxu1 %v1502_v23 }
 0x2d0   :  { %1047 = vmatprep.subr.mxu1 %v1775_v59 }
 0x2d1   :  { %1048 = vmatpush3.msra.mxu1 %v1510_v25 }
 0x2d2   :  { %1049 = vmatprep.subr.mxu1 %v1775_v59 }
 0x2d3   :  { %1050 = vmatpush3.msra.mxu1 %v1519_v27 }
 0x2d4   :  { %1051 = vmatprep.subr.mxu1 %v1775_v59 }
 0x2d5   :  { %1052 = vmatpush3.msra.mxu1 %v1528_v29 }
 0x355   :  { %v447_v0 = vpop.f32.mrf.mxu1 }
 0x356   :  { %v451_v35 = vmul.f32 0.03125, %v447_v0 }
 0x357   :  { %v985_v37 = vpop.f32.mrf.mxu1 }
 0x358   :  { %v452_v49 = vadd.f32 1e-05, %v451_v35 }
 0x35a   :  { %1064 = vrsqrt.f32 %v452_v49 }
 0x367   :  { %v1065_v51 = vpop.eup %1064 }
 0x368   :  { %v454_v55 = vmul.f32 %v1065_v51, %v1622_v5 }
 0x36a   :  { %v461_v57 = vmul.f32 %v776_v53, %v454_v55 }
 0x36c   :  { %v468_v58 = vadd.f32 %v777_v56, %v461_v57 }
 0x36e   :  { %469 = vst [vmem:[%s1717_s9] sm:$0xff] %v468_v58 }
 0x376   :  { %v879_v59 = vpop.f32.mrf.mxu1 }
 0x378   :  { %v880_v60 = vpop.f32.mrf.mxu1 }
 0x379   :  { %v881_v61 = vadd.f32 %v880_v60, %v879_v59 }
 0x37b   :  { %v611_v62 = vadd.f32 %v881_v61, %v1542_v33 }
 0x37d   :  { %v614_v63 = vadd.f32 %v611_v62, %v1582_v1 }
 0x37f   :  { %1019 = vmatmul.mubr.f32.vlgmr.msra.gmra.mxu0 %v614_v63 }
 0x43f   :  { %v681_v23 = vpop.f32.mrf.mxu0 }
 0x440   :  { %v685_v25 = vmul.f32 0.03125, %v681_v23 }
 0x441   :  { %v1020_v27 = vpop.f32.mrf.mxu0 }
 0x442   :  { %v686_v29 = vsub.f32 %v614_v63, %v685_v25 }
 0x444   :  { %v687_v31 = vmul.f32 %v686_v29, %v686_v29 }
 0x446   :  { %1054 = vmatmul.mubr.f32.vlgmr.msra.gmra.mxu1 %v687_v31 }
 0x506   :  { %v754_v39 = vpop.f32.mrf.mxu1 }
 0x507   :  { %v758_v41 = vmul.f32 0.03125, %v754_v39 }
 0x508   :  { %v1055_v43 = vpop.f32.mrf.mxu1 }
 0x509   :  { %v759_v45 = vadd.f32 1e-05, %v758_v41 }
 0x50b   :  { %1066 = vrsqrt.f32 %v759_v45 }
 0x518   :  { %v1067_v2 = vpop.eup %1066 }
 0x519   :  { %v761_v3 = vmul.f32 %v1067_v2, %v686_v29 }
 0x51b   :  { %v762_v4 = vmul.f32 %v776_v53, %v761_v3 }
 0x51d   :  { %v763_v5 = vadd.f32 %v777_v56, %v762_v4 }
 0x51f   :  { %764 = vst [vmem:[%s1718_s10] sm:$0xff] %v763_v5 }
 0x520   :  { %773 = vsyncpa [#allocation3], 1 }
 0x521   :  { %774 = vsyncpa [#allocation5], 1 }

</bundles_post_ra>
